<compile_context>
chip_gen: v5e
topology: v5e:2x2
jax: 0.10.0
libtpu: 0.0.40
codegen_flags: <defaults>
</compile_context>

<pallas_src>
import functools

import jax
import jax.numpy as jnp
from jax.experimental import pallas as pl
from jax.experimental.pallas import tpu as pltpu


# ----------------------------------------------------------------------------
# Embedding lookup: scalar-prefetch-driven row gather.
# Table is reshaped to (V, 1, E) so every block's trailing two dims equal the
# full array dims (always-legal BlockSpec).
# ----------------------------------------------------------------------------
def _embed_gather_kernel(ids_ref, row_ref, out_ref):
    del ids_ref  # only used inside the index_maps
    out_ref[...] = row_ref[...]


def embedding_lookup(ids, emb_table):
    n = ids.shape[0]
    v, e = emb_table.shape
    emb3 = emb_table.reshape(v, 1, e)
    out = pl.pallas_call(
        _embed_gather_kernel,
        out_shape=jax.ShapeDtypeStruct((n, 1, e), emb_table.dtype),
        grid_spec=pltpu.PrefetchScalarGridSpec(
            num_scalar_prefetch=1,
            grid=(n,),
            in_specs=[pl.BlockSpec((1, 1, e), lambda i, ids_ref: (ids_ref[i], 0, 0))],
            out_specs=pl.BlockSpec((1, 1, e), lambda i, ids_ref: (i, 0, 0)),
        ),
    )(ids.astype(jnp.int32), emb3)
    return out.reshape(n, e)


# ----------------------------------------------------------------------------
# Fused bidirectional LSTM layer.
#   inputs : x (single (S,Bt,Din)) or the previous layer's (x_fwd, x_bwd) pair
#   weights: wih (Din,8H) [or (2,H,8H) for dual input], whh (2,H,4H), bias (1,8H)
#   outputs: (out_fwd, out_bwd) each (S,Bt,H), or fused FC head (Bt,out_dim)
#   scratch: xproj_fwd / xproj_bwd, each (S,Bt,4H) f32  (hoisted input projection)
# Gate order i, f, g, o; bias = b_ih + b_hh (PyTorch semantics).
# ----------------------------------------------------------------------------
def _bilstm_kernel(*refs, hidden_dim, seq_len, dual_input, fuse_fc):
    h = hidden_dim
    s = seq_len

    idx = 0
    if dual_input:
        xf_ref, xb_ref = refs[0], refs[1]
        idx = 2
    else:
        x_ref = refs[0]
        idx = 1
    wih_ref, whh_ref, bias_ref = refs[idx], refs[idx + 1], refs[idx + 2]
    idx += 3
    if fuse_fc:
        fcw_ref, fcb_ref = refs[idx], refs[idx + 1]
        fc_out_ref = refs[idx + 2]
        idx += 3
        outf_ref = outb_ref = None
    else:
        outf_ref, outb_ref = refs[idx], refs[idx + 1]
        idx += 2
    xpf_ref, xpb_ref = refs[idx], refs[idx + 1]

    # ---- hoisted input projection: one big bf16 MXU matmul over the whole sequence ----
    if dual_input:
        bt = xf_ref.shape[1]
        xf2 = xf_ref[...].reshape(s * bt, h).astype(jnp.bfloat16)
        xb2 = xb_ref[...].reshape(s * bt, h).astype(jnp.bfloat16)
        proj = (jnp.dot(xf2, wih_ref[0], preferred_element_type=jnp.float32)
                + jnp.dot(xb2, wih_ref[1], preferred_element_type=jnp.float32))
    else:
        bt = x_ref.shape[1]
        din = x_ref.shape[2]
        x2 = x_ref[...].reshape(s * bt, din).astype(jnp.bfloat16)
        proj = jnp.dot(x2, wih_ref[...], preferred_element_type=jnp.float32)
    proj = proj + bias_ref[...]                           # (S*Bt, 8H) f32, bias folded in
    xpf_ref[...] = proj[:, :4 * h].reshape(s, bt, 4 * h)   # forward gate pre-activations
    xpb_ref[...] = proj[:, 4 * h:].reshape(s, bt, 4 * h)   # backward gate pre-activations

    whh_f = whh_ref[0]                                    # (H, 4H) bf16, hoisted
    whh_b = whh_ref[1]

    def gate_math(g, c):                                  # f32 elementwise (v5e-friendly)
        i_g = jax.nn.sigmoid(g[:, 0 * h:1 * h])
        f_g = jax.nn.sigmoid(g[:, 1 * h:2 * h])
        g_g = jnp.tanh(g[:, 2 * h:3 * h])
        o_g = jax.nn.sigmoid(g[:, 3 * h:4 * h])
        c_new = f_g * c + i_g * g_g
        h_new = o_g * jnp.tanh(c_new)
        return h_new, c_new

    def step(t, carry):
        h_f, c_f, h_b, c_b = carry                        # each (Bt, H) f32
        g_f = xpf_ref[t] + jnp.dot(h_f.astype(jnp.bfloat16), whh_f,
                                   preferred_element_type=jnp.float32)
        g_b = xpb_ref[s - 1 - t] + jnp.dot(h_b.astype(jnp.bfloat16), whh_b,
                                           preferred_element_type=jnp.float32)
        h_f, c_f = gate_math(g_f, c_f)
        h_b, c_b = gate_math(g_b, c_b)
        if not fuse_fc:
            # lane-dense full-width stores; backward rows stored at time-reversed positions
            outf_ref[pl.ds(t, 1)] = h_f[None].astype(outf_ref.dtype)
            outb_ref[pl.ds(s - 1 - t, 1)] = h_b[None].astype(outb_ref.dtype)
        return h_f, c_f, h_b, c_b

    zero = jnp.zeros((bt, h), jnp.float32)
    h_f, _, h_b, _ = jax.lax.fori_loop(0, s, step, (zero, zero, zero, zero), unroll=4)

    if fuse_fc:
        out = (jnp.dot(h_f.astype(jnp.bfloat16), fcw_ref[0],
                       preferred_element_type=jnp.float32)
               + jnp.dot(h_b.astype(jnp.bfloat16), fcw_ref[1],
                         preferred_element_type=jnp.float32)
               + fcb_ref[...])
        fc_out_ref[...] = out.astype(fc_out_ref.dtype)


def _full_spec(shape):
    zeros = (0,) * len(shape)
    return pl.BlockSpec(shape, lambda i: zeros)


def _nbytes(shape, itemsize):
    n = 1
    for d in shape:
        n *= d
    return n * itemsize


def _bilstm_call(x_list, layer, hidden_dim, fc=None, batch_tile=None):
    dual = len(x_list) == 2
    s, b = x_list[0].shape[0], x_list[0].shape[1]
    h = hidden_dim
    bt = b if batch_tile is None else min(batch_tile, b)
    grid = (pl.cdiv(b, bt),)
    fuse_fc = fc is not None

    in_arrays = list(x_list) + [layer["wih"], layer["whh"], layer["bias"]]
    in_specs = [pl.BlockSpec((s, bt, x.shape[2]), lambda i: (0, i, 0)) for x in x_list]
    in_specs += [_full_spec(layer["wih"].shape),
                 _full_spec(layer["whh"].shape),
                 _full_spec(layer["bias"].shape)]

    if fuse_fc:
        fc_wt, fc_b = fc
        out_dim = fc_wt.shape[-1]
        in_arrays += [fc_wt, fc_b]
        in_specs += [_full_spec(fc_wt.shape), _full_spec(fc_b.shape)]
        out_shape = jax.ShapeDtypeStruct((b, out_dim), jnp.float32)
        out_specs = pl.BlockSpec((bt, out_dim), lambda i: (i, 0))
        out_bytes = _nbytes((bt, out_dim), 4)
    else:
        out_shape = (jax.ShapeDtypeStruct((s, b, h), jnp.float32),
                     jax.ShapeDtypeStruct((s, b, h), jnp.float32))
        out_specs = (pl.BlockSpec((s, bt, h), lambda i: (0, i, 0)),
                     pl.BlockSpec((s, bt, h), lambda i: (0, i, 0)))
        out_bytes = 2 * _nbytes((s, bt, h), 4)

    scratch = [pltpu.VMEM((s, bt, 4 * h), jnp.float32),
               pltpu.VMEM((s, bt, 4 * h), jnp.float32)]

    # VMEM budget: double-buffered I/O tiles + (bf16) weights + f32 scratch + margin.
    x_bytes = sum(_nbytes((s, bt, x.shape[2]), 4) for x in x_list)
    w_bytes = sum(int(a.size) * a.dtype.itemsize for a in in_arrays[len(x_list):])
    scratch_bytes = 2 * _nbytes((s, bt, 4 * h), 4)
    est = 2 * (x_bytes + w_bytes + out_bytes) + scratch_bytes + (4 << 20)
    vmem_limit = int(min(max(est, 16 << 20), 100 << 20))

    kernel = functools.partial(_bilstm_kernel, hidden_dim=h, seq_len=s,
                               dual_input=dual, fuse_fc=fuse_fc)
    return pl.pallas_call(
        kernel,
        out_shape=out_shape,
        grid=grid,
        in_specs=in_specs,
        out_specs=out_specs,
        scratch_shapes=scratch,
        compiler_params=pltpu.CompilerParams(
            dimension_semantics=("parallel",),
            vmem_limit_bytes=vmem_limit),
    )(*in_arrays)


# ----------------------------------------------------------------------------
# Full forward pass: n_layers + 1 kernel launches total.
# ----------------------------------------------------------------------------
def rnn_forward(text, prep, hidden_dim, n_layers, batch_tile=None):
    s, b = text.shape
    e = prep["embedding"].shape[1]
    x = embedding_lookup(text.reshape(-1), prep["embedding"]).reshape(s, b, e)
    # self.dropout(...) -> identity (eval mode)
    x_list = [x]
    for l in range(n_layers - 1):
        x_f, x_b = _bilstm_call(x_list, prep["lstm"][l], hidden_dim,
                                batch_tile=batch_tile)
        x_list = [x_f, x_b]
        # inter-layer dropout -> identity (eval mode)
    return _bilstm_call(x_list, prep["lstm"][n_layers - 1], hidden_dim,
                        fc=(prep["fc_wt"], prep["fc_b"]), batch_tile=batch_tile)


# ----------------------------------------------------------------------------
# Deterministic parameter initialization (same shapes as the PyTorch module)
# and one-time weight preparation (transpose / stack / bf16 cast), hoisted out
# of the forward pass.
# ----------------------------------------------------------------------------
def init_params(key, vocab_size, emb_dim, hidden_dim, output_dim, n_layers, pad_idx):
    hd = hidden_dim
    scale = 1.0 / (hd ** 0.5)
    keys = jax.random.split(key, 3 + n_layers)

    def u(kk, shape):
        return jax.random.uniform(kk, shape, jnp.float32, -scale, scale)

    emb = jax.random.normal(keys[0], (vocab_size, emb_dim), jnp.float32) * 0.1
    emb = emb.at[pad_idx].set(0.0)            # padding_idx row is zero

    lstm_params = []
    for l in range(n_layers):
        din = emb_dim if l == 0 else 2 * hd
        k = jax.random.split(keys[3 + l], 8)
        lstm_params.append(dict(
            wih_f=u(k[0], (4 * hd, din)), whh_f=u(k[1], (4 * hd, hd)),
            b_f=u(k[2], (1, 4 * hd)) + u(k[3], (1, 4 * hd)),     # b_ih + b_hh
            wih_b=u(k[4], (4 * hd, din)), whh_b=u(k[5], (4 * hd, hd)),
            b_b=u(k[6], (1, 4 * hd)) + u(k[7], (1, 4 * hd)),
        ))

    fc_w = u(keys[1], (output_dim, 2 * hd))
    fc_b = u(keys[2], (output_dim,))
    return dict(embedding=emb, lstm=lstm_params, fc_w=fc_w, fc_b=fc_b)


def prepare_params(raw):
    """One-time transpose/stack + bf16 cast of MXU weights for the fused kernels."""
    layers = []
    for l, p in enumerate(raw["lstm"]):
        h = p["whh_f"].shape[1]
        # (Din, 8H): columns [0:4H] forward gates, [4H:8H] backward gates (order i,f,g,o)
        wih = jnp.concatenate([p["wih_f"].T, p["wih_b"].T], axis=1)
        if l > 0:
            # dual-input layers: rows [0:H] multiply x_fwd, rows [H:2H] multiply x_bwd
            wih = wih.reshape(2, h, 8 * h)
        whh = jnp.stack([p["whh_f"].T, p["whh_b"].T], axis=0)          # (2, H, 4H)
        bias = jnp.concatenate([p["b_f"], p["b_b"]], axis=1)           # (1, 8H)
        layers.append(dict(wih=wih.astype(jnp.bfloat16),
                           whh=whh.astype(jnp.bfloat16),
                           bias=bias.astype(jnp.float32)))
    h = raw["lstm"][0]["whh_f"].shape[1]
    fc_wt = raw["fc_w"].T.reshape(2, h, -1).astype(jnp.bfloat16)       # (2, H, out_dim)
    fc_b = raw["fc_b"].reshape(1, -1).astype(jnp.float32)
    return dict(embedding=raw["embedding"], lstm=layers, fc_wt=fc_wt, fc_b=fc_b)


# ----------------------------------------------------------------------------
# Pure-JAX f32 reference (PyTorch semantics) for the correctness check.
# ----------------------------------------------------------------------------
def rnn_forward_ref(text, raw, hidden_dim, n_layers):
    s, b = text.shape
    hd = hidden_dim
    x = raw["embedding"][text.reshape(-1)].reshape(s, b, -1)
    hf = hb = None
    for l in range(n_layers):
        p = raw["lstm"][l]

        def run(xseq, wih, whh, bias):
            def step(carry, xt):
                hc, cc = carry
                g = (jnp.dot(xt, wih.T, precision="highest")
                     + jnp.dot(hc, whh.T, precision="highest") + bias[0])
                i = jax.nn.sigmoid(g[:, :hd])
                f = jax.nn.sigmoid(g[:, hd:2 * hd])
                gg = jnp.tanh(g[:, 2 * hd:3 * hd])
                o = jax.nn.sigmoid(g[:, 3 * hd:])
                cc = f * cc + i * gg
                hc = o * jnp.tanh(cc)
                return (hc, cc), hc

            init = (jnp.zeros((b, hd), jnp.float32), jnp.zeros((b, hd), jnp.float32))
            (h_last, _), ys = jax.lax.scan(step, init, xseq)
            return ys, h_last

        out_f, hf = run(x, p["wih_f"], p["whh_f"], p["b_f"])
        out_b_rev, hb = run(x[::-1], p["wih_b"], p["whh_b"], p["b_b"])
        x = jnp.concatenate([out_f, out_b_rev[::-1]], axis=-1)
    hidden = jnp.concatenate([hf, hb], axis=1)
    return jnp.dot(hidden, raw["fc_w"].T, precision="highest") + raw["fc_b"]


if __name__ == "__main__":
    vocab_size, emb_dim, hidden_dim, output_dim = 50, 32, 32, 4
    n_layers, pad_idx = 2, 0
    seq_len, batch = 8, 2

    key = jax.random.PRNGKey(0)
    k_text, k_params = jax.random.split(key)
    text = jax.random.randint(k_text, (seq_len, batch), 0, vocab_size, dtype=jnp.int32)
    raw = init_params(k_params, vocab_size, emb_dim, hidden_dim, output_dim,
                      n_layers, pad_idx)
    prep = prepare_params(raw)

    out = rnn_forward(text, prep, hidden_dim, n_layers)
    out = jax.block_until_ready(out)
    assert out.shape == (batch, output_dim) and out.dtype == jnp.float32

    ref = jax.block_until_ready(rnn_forward_ref(text, raw, hidden_dim, n_layers))
    # Kernel uses bf16 MXU operands (f32 accumulation / gate state) vs. an exact-f32
    # reference, hence the relaxed tolerance.
    assert jnp.allclose(out, ref, atol=5e-2, rtol=5e-2), (out, ref)
    print("KERNEL_OK")
</pallas_src>

<mosaic_0001>
module attributes {stable_mosaic.version = 11 : i64} {
  func.func @_embed_gather_kernel(%arg0: i32, %arg1: memref<16xi32, #tpu.memory_space<smem>>, %arg2: memref<1x1x32xf32, #tpu.memory_space<vmem>>, %arg3: memref<1x1x32xf32, #tpu.memory_space<vmem>>) attributes {dimension_semantics = [#tpu.dimension_semantics<arbitrary>], iteration_bounds = array<i64: 16>, scalar_prefetch = 1 : i64, scratch_operands = 0 : i64, tpu.core_type = #tpu.core_type<tc>, window_params = [{transform_indices = @transform_0, window_bounds = array<i64: 1, 1, 32>}, {transform_indices = @transform_1, window_bounds = array<i64: 1, 1, 32>}]} {
    %c0 = arith.constant 0 : index
    %c0_0 = arith.constant 0 : index
    %c0_1 = arith.constant 0 : index
    %0 = vector.load %arg2[%c0, %c0_0, %c0_1] : memref<1x1x32xf32, #tpu.memory_space<vmem>>, vector<1x1x32xf32>
    %c0_2 = arith.constant 0 : index
    %c0_3 = arith.constant 0 : index
    %c0_4 = arith.constant 0 : index
    %1 = vector.load %arg3[%c0_2, %c0_3, %c0_4] : memref<1x1x32xf32, #tpu.memory_space<vmem>>, vector<1x1x32xf32>
    tpu.vector_store %arg3[%c0_2, %c0_3, %c0_4], %0 {strides = array<i32>} : memref<1x1x32xf32, #tpu.memory_space<vmem>>, vector<1x1x32xf32>,
    return
  }
  func.func @transform_0(%arg0: i32, %arg1: memref<16xi32, #tpu.memory_space<smem>>) -> (i32, i32, i32) {
    %0 = arith.index_cast %arg0 : i32 to index
    %1 = memref.load %arg1[%0] : memref<16xi32, #tpu.memory_space<smem>>
    %c0_i32 = arith.constant 0 : i32
    %c0_i32_0 = arith.constant 0 : i32
    %c0_i32_1 = arith.constant 0 : i32
    return %1, %c0_i32, %c0_i32_0 : i32, i32, i32
  }
  func.func @transform_1(%arg0: i32, %arg1: memref<16xi32, #tpu.memory_space<smem>>) -> (i32, i32, i32) {
    %c0_i32 = arith.constant 0 : i32
    %c0_i32_0 = arith.constant 0 : i32
    %c0_i32_1 = arith.constant 0 : i32
    return %arg0, %c0_i32, %c0_i32_0 : i32, i32, i32
  }
}

</mosaic_0001>

<bundles_post_ra>
// kernel: tpu_custom_call.1
= control target key start
LH: loop header
LB: loop body
LE: loop exit
PB: predicated region body
PF: predicated region fallthrough
CT: control target
= control target key end

     0   :  { %s316_s12 = smov [#allocation3]   ;;  %s414_s0 = inlined_call_operand.vmem [shape: s32[16], index: 0, kind: input, shape index: {}]   ;;  %s415_s1 = inlined_call_operand.vmem [shape: f32[50,1,32], index: 1, kind: input, shape index: {}]   ;;  %s416_s2 = inlined_call_operand.hbm [shape: f32[16,1,32], index: 2, kind: output, shape index: {}]  }
   0x1   :  { %s8_s11 = sshll.u32 %s414_s0, 4  ;;  %s9_s11 = int_to_ptr.vmem [resolvable:$true] %s8_s11 }
   0x2   :  { %11 = dma.vmem_to_smem %s9_s11, 16, %s316_s12, [#allocation2] }
   0x3   :  { %294 = dma.done.wait [#allocation2], 16 }
   0x4   :  { %295 = vsyncadd [#allocation2], 4294967280 }
   0x5   :  { %14 = sfence }
   0x6   :  { %15 = vsyncpa [#allocation5], 0 }
   0x7   :  { %17 = vsyncpa [#allocation5 + $0x1], 0  ;;  %s335_s13 = smov 0   ;;  %s337_s14 = smov 0  }
   0x8   :  { %s339_s15 = smov 0   ;;  %s341_s16 = smov 0  }
   0x9 LB: > { %s191_s0 = sadd.s32 4294967295, %s314_s16   ;;  %s192_s17 = sadd.s32 4294967294, %s314_s16   ;;  %s314_s16 = sphi %s341_s16, %s422_s16   ;;  %s310_s15 = sphi %s339_s15, %s421_s15   ;;  %s306_s14 = sphi %s337_s14, %s420_s14   ;;  %s302_s13 = sphi %s335_s13, %s419_s13  }
   0xa   : > { %s358_s18 = sadd.s32 1, %s314_s16   ;;  %s58_s19 = sadd.s32 1, %s310_s15 }
   0xb   : > { %s55_s20 = ssub.s32 %s314_s16, %s358_s18  ;;  %p68_p0 = scmp.ne.s32.totalorder %s310_s15, %s306_s14 }
   0xc   : > { %p56_p1 = scmp.eq.s32.totalorder %s55_s20, 0  ;;  %p69_p2 = scmp.eq.s32.totalorder %s191_s0, 15 }
   0xd   : > { %p74_p3 = scmp.ne.s32.totalorder %s306_s14, %s302_s13  ;;  %p75_p4 = scmp.eq.s32.totalorder %s192_s17, 15 }
   0xe   : > { %s368_s21 = scalar_select %p56_p1, %s310_s15, %s58_s19  }
   0xf   : > { %p370_p5 = por %p69_p2, %p68_p0  ;;  %p374_p6 = por %p75_p4, %p74_p3 }
  0x10   : > { %p195_p7 = scmp.ge.s32.totalorder %s314_s16, 1  ;;  %p101_p8 = scmp.lt.s32.totalorder %s314_s16, 17 }
  0x12   : > { %p102_p9 = pnand %p195_p7, %p101_p8 }
  0x13   : > { %s117_s24 = sand.u32 (!%p102_p9), 1, %s306_s14   ;;  %s119_s25 = sld [smem:[#allocation3 + %s191_s0]] (!%p102_p9) }
  0x14   : > { %105 = sbr.rel (%p102_p9) target bundleno = 35 (0x23), region = 24  ;;  %s136_s28 = scalar_lea.hbm (!%p102_p9), %s416_s2, %s191_s0 }
  0x15   : > { %s118_s29 = scalar_lea.vmem (!%p102_p9), [#allocation4], %s117_s24  ;;  %s140_s3 = sshll.u32 (!%p102_p9), %s136_s28, 4  ;;  %s141_s3 = int_to_ptr.hbm [resolvable:$true] %s140_s3 }
  0x16   : > { %s138_s30 = sshll.u32 (!%p102_p9), %s118_s29, 4  ;;  %s128_s7 = scalar_lea.sflag (!%p102_p9), [#allocation5], %s117_s24  ;;  %s139_s30 = int_to_ptr.vmem [resolvable:$true] %s138_s30 }
  0x17   : > { %s264_s8 = sshra.s32 (!%p102_p9), %s141_s3, 4  ;;  %s270_s12 = scalar_lea.hbm (!%p102_p9), %s416_s2, 16  ;;  %s265_s8 = int_to_ptr.hbm [resolvable:$true] %s264_s8 }
  0x18   : > { %s266_s9 = scalar_lea.hbm (!%p102_p9), %s265_s8, 1  ;;  %p271_p0 = scmp.lt.s32.totalorder (!%p102_p9), %s265_s8, %s416_s2 }
  0x19   : > { %p120_p10 = scmp.lt.s32.totalorder %s119_s25, 49  ;;  %vm125_vm0 = vcmask 253952   ;;  %p267_p11 = scmp.ne.s32.totalorder %s265_s8, %s266_s9 }
  0x1a   : > { %p272_p1 = scmp.lt.s32.totalorder %s270_s12, %s266_s9 }
  0x1b   : > { %s424_s25 = smov (!%p120_p10, %s119_s25), 49  ;;  %p268_p12 = pnand %p267_p11, %p370_p5 }
  0x1c   : > { %s122_s6 = scalar_lea.vmem %s415_s1, %s424_s25  ;;  %p273_p2 = por %p272_p1, %p271_p0 }
  0x1d   : > { %v124_v0 = vld [vmem:[%s122_s6] sm:$0x1]  ;;  %p269_p13 = pneg %p268_p12 }
  0x1e   : > { %126 = vst.msk [vmem:[%s118_s29] sm:$0x1] %vm125_vm0, %v124_v0 }
  0x1f   : > { %p274_p3 = pnand %p273_p2, %p269_p13 }
  0x21   : > { %277 = shalt.err (!%p274_p3)
}
  0x22   : > { %198 = dma.vmem_to_hbm [thread:$0]  (%p370_p5), %s139_s30, 16, %s141_s3, %s128_s7  }
  0x23 PF: > { %p204_p4 = scmp.ge.s32.totalorder %s314_s16, 2  ;;  %s152_s19 = sand.u32 1, %s302_s13  }
  0x24   : > { %s153_s20 = scalar_lea.sflag [#allocation5], %s152_s19 }
  0x25   : > { %p201_p7 = pnand %p204_p4, %p374_p6 }
  0x27   : > { %p202_p8 = pneg %p201_p7 }
  0x29   : > { %297 = dma.done.wait (%p202_p8), %s153_s20, 16  }
  0x2a   : > { %299 = vsyncadd (%p202_p8), %s153_s20, 4294967280  ;;  %p20_p9 = scmp.ge.s32.totalorder %s358_s18, 18   ;;  %s419_s13 = smov %s306_s14 }
  0x2b   : > { %s420_s14 = smov %s310_s15  ;;  %s421_s15 = smov %s368_s21 }
  0x2c   : > { %s422_s16 = smov %s358_s18  ;;  %22 = sbr.rel (!%p20_p9) target bundleno = 9 (0x9), region = 59 }
  0x31   :  { %158 = vsyncpa [#allocation5], 1 }
  0x32   :  { %160 = vsyncpa [#allocation5 + $0x1], 1 }

</bundles_post_ra>
